<compile_context>
chip_gen: v5e
topology: v5e:2x2
jax: 0.10.0
libtpu: 0.0.40
codegen_flags: <defaults>
</compile_context>

<pallas_src>
import math

import jax
import jax.numpy as jnp
from jax.experimental import pallas as pl
from jax.experimental.pallas import tpu as pltpu


def _tagging_projector_kernel(h_ref, w_ref, b_ref, o_ref):
    # h_ref: (TM, H) bf16 | w_ref: (H, Np) bf16 | b_ref: (1, Np) f32 | o_ref: (TM, Np) f32
    acc = jnp.dot(h_ref[...], w_ref[...], preferred_element_type=jnp.float32)
    o_ref[...] = (acc + b_ref[...]).astype(o_ref.dtype)


def _round_up(x, m):
    return ((x + m - 1) // m) * m


def _pick_tile_m(m_total, hidden_size, n_pad, in_bytes, out_bytes,
                 budget_bytes=12 * 1024 * 1024):
    """Largest M tile (multiple of 8, <= 1024) whose double-buffered streaming
    footprint (hidden in + output out) stays within a budget that fits the
    default scoped VMEM on v5e/v6e/v7x."""
    if m_total <= 1024:
        return m_total                      # one full-extent block; no ragged edge
    tm = 1024
    while tm > 256:
        streaming = 2 * tm * hidden_size * in_bytes + 2 * tm * n_pad * out_bytes
        if streaming <= budget_bytes:
            break
        tm //= 2
    return tm


def tagging_projector(hidden, weights, biases, *,
                      compute_dtype=jnp.bfloat16,
                      tile_m=None,
                      return_lane_dense=False):
    """Pallas implementation of TaggingProjector.forward.

    Args:
      hidden:  (B, T, H) float32, T = 1 + 2 + ... + seq_len
      weights: (R, 3, H) float32  (one nn.Linear weight per relation)
      biases:  (R, 3)    float32
      compute_dtype: dtype fed to the MXU (bf16 halves HBM reads; accumulation
        is always float32).
      tile_m: optional override for the M (=B*T) tile size.
      return_lane_dense: if True, return the lane-dense (B, T, R, 3) layout and
        skip the trailing transpose (fold the permutation into the consumer).

    Returns:
      (B, R, T, 3) float32  (or (B, T, R, 3) if return_lane_dense=True).
    """
    B, T, H = hidden.shape
    R = weights.shape[0]
    RT = R * 3
    n_pad = _round_up(max(RT, 128), 128)        # lane-dense output width
    M = B * T                                   # fused batch*token axis

    # Pack per-relation Linear weights into one (H, R*3) operand; zero-pad the
    # N axis to n_pad so stores are unmasked.  Bias stays f32.
    w_packed = jnp.transpose(weights.reshape(RT, H))                 # (H, RT)
    w_packed = jnp.pad(w_packed, ((0, 0), (0, n_pad - RT)))
    w_packed = w_packed.astype(compute_dtype)                        # (H, n_pad)
    b_packed = jnp.pad(biases.reshape(1, RT).astype(jnp.float32),
                       ((0, 0), (0, n_pad - RT)))                    # (1, n_pad)
    h_flat = hidden.reshape(M, H).astype(compute_dtype)              # (M, H)

    in_bytes = jnp.dtype(compute_dtype).itemsize
    tm = tile_m if tile_m is not None else _pick_tile_m(M, H, n_pad, in_bytes, 4)
    grid = (pl.cdiv(M, tm),)

    cost = pl.CostEstimate(
        flops=2 * M * H * n_pad,
        transcendentals=0,
        bytes_accessed=(M * H * in_bytes          # hidden read (dominant)
                        + H * n_pad * in_bytes    # packed weight
                        + n_pad * 4               # bias
                        + M * n_pad * 4))         # f32 output write

    out_flat = pl.pallas_call(
        _tagging_projector_kernel,
        out_shape=jax.ShapeDtypeStruct((M, n_pad), jnp.float32),
        grid_spec=pltpu.PrefetchScalarGridSpec(
            num_scalar_prefetch=0,
            grid=grid,
            in_specs=[
                pl.BlockSpec((tm, H), lambda m: (m, 0)),
                # Grid-invariant weight/bias: constant index_map -> DMA'd once.
                pl.BlockSpec((H, n_pad), lambda m: (0, 0)),
                pl.BlockSpec((1, n_pad), lambda m: (0, 0)),
            ],
            out_specs=pl.BlockSpec((tm, n_pad), lambda m: (m, 0)),
        ),
        compiler_params=pltpu.CompilerParams(
            dimension_semantics=("parallel",)),
        cost_estimate=cost,
    )(h_flat, w_packed, b_packed)

    out = out_flat[:, :RT].reshape(B, T, R, 3)      # drop lane padding
    if return_lane_dense:
        return out                                   # (B, T, R, 3), lane-dense
    # Layout glue only; matches torch.stack(outputs, dim=1) -> (B, R, T, 3).
    return jnp.transpose(out, (0, 2, 1, 3))


def init_params(key, hidden_size, num_relations):
    """Deterministic nn.Linear-style init: U(-1/sqrt(H), 1/sqrt(H))."""
    bound = 1.0 / math.sqrt(hidden_size)
    kw, kb = jax.random.split(key)
    weights = jax.random.uniform(
        kw, (num_relations, 3, hidden_size), jnp.float32, -bound, bound)
    biases = jax.random.uniform(
        kb, (num_relations, 3), jnp.float32, -bound, bound)
    return weights, biases


if __name__ == "__main__":
    # Small shapes consistent with the module's forward:
    #   batch=2, seq_len=8 -> T = 1+2+...+8 = 36, hidden_size=32, num_relations=4
    batch, seq_len, hidden_size, num_relations = 2, 8, 32, 4
    T = seq_len * (seq_len + 1) // 2

    key = jax.random.PRNGKey(0)
    k_h, k_p = jax.random.split(key)
    hidden = jax.random.normal(k_h, (batch, T, hidden_size), jnp.float32)
    weights, biases = init_params(k_p, hidden_size, num_relations)

    out = tagging_projector(hidden, weights, biases)
    out = jax.block_until_ready(out)
    assert out.shape == (batch, num_relations, T, 3), out.shape

    # Reference with matching bf16 input rounding (f32 accumulation).
    h_bf = hidden.astype(jnp.bfloat16).astype(jnp.float32)
    w_bf = weights.astype(jnp.bfloat16).astype(jnp.float32)
    ref_bf = jnp.stack(
        [h_bf @ w_bf[r].T + biases[r] for r in range(num_relations)], axis=1)
    assert jnp.allclose(out, ref_bf, atol=1e-3, rtol=1e-3), "bf16-matched ref mismatch"

    # Coarse check against the exact f32 PyTorch-equivalent math.
    ref_f32 = jnp.stack(
        [hidden @ weights[r].T + biases[r] for r in range(num_relations)], axis=1)
    assert jnp.allclose(out, ref_f32, atol=5e-2, rtol=5e-2), "f32 ref mismatch"

    print("KERNEL_OK")
</pallas_src>

<mosaic_0001>
module attributes {stable_mosaic.version = 11 : i64} {
  func.func @_tagging_projector_kernel(%arg0: i32, %arg1: memref<72x32xbf16, #tpu.memory_space<vmem>>, %arg2: memref<32x128xbf16, #tpu.memory_space<vmem>>, %arg3: memref<1x128xf32, #tpu.memory_space<vmem>>, %arg4: memref<72x128xf32, #tpu.memory_space<vmem>>) attributes {dimension_semantics = [#tpu.dimension_semantics<parallel>], iteration_bounds = array<i64: 1>, scalar_prefetch = 0 : i64, scratch_operands = 0 : i64, tpu.core_type = #tpu.core_type<tc>, window_params = [{transform_indices = @transform_0, window_bounds = array<i64: 72, 32>}, {pipeline_mode = #tpu.pipeline_mode<synchronous>, transform_indices = @transform_1, window_bounds = array<i64: 32, 128>}, {pipeline_mode = #tpu.pipeline_mode<synchronous>, transform_indices = @transform_2, window_bounds = array<i64: 1, 128>}, {transform_indices = @transform_3, window_bounds = array<i64: 72, 128>}]} {
    %c0 = arith.constant 0 : index
    %c0_0 = arith.constant 0 : index
    %0 = vector.load %arg1[%c0, %c0_0] : memref<72x32xbf16, #tpu.memory_space<vmem>>, vector<72x32xbf16>
    %c0_1 = arith.constant 0 : index
    %c0_2 = arith.constant 0 : index
    %1 = vector.load %arg2[%c0_1, %c0_2] : memref<32x128xbf16, #tpu.memory_space<vmem>>, vector<32x128xbf16>
    %cst = arith.constant dense<0.000000e+00> : vector<72x128xf32>
    %2 = tpu.matmul %0, %1, %cst {dimension_numbers = #tpu.dot_dimension_numbers<[1], [0], [0], [1], [0, 0, 1, 1], [], []>} : vector<72x32xbf16>, vector<32x128xbf16>, vector<72x128xf32> -> vector<72x128xf32>
    %c0_3 = arith.constant 0 : index
    %c0_4 = arith.constant 0 : index
    %3 = vector.load %arg3[%c0_3, %c0_4] : memref<1x128xf32, #tpu.memory_space<vmem>>, vector<1x128xf32>
    %4 = vector.broadcast %3 : vector<1x128xf32> to vector<72x128xf32>
    %5 = arith.addf %2, %4 : vector<72x128xf32>
    %c0_5 = arith.constant 0 : index
    %c0_6 = arith.constant 0 : index
    %6 = vector.load %arg4[%c0_5, %c0_6] : memref<72x128xf32, #tpu.memory_space<vmem>>, vector<72x128xf32>
    tpu.vector_store %arg4[%c0_5, %c0_6], %5 {strides = array<i32>} : memref<72x128xf32, #tpu.memory_space<vmem>>, vector<72x128xf32>,
    return
  }
  func.func @transform_0(%arg0: i32) -> (i32, i32) {
    %c0_i32 = arith.constant 0 : i32
    %c0_i32_0 = arith.constant 0 : i32
    return %arg0, %c0_i32 : i32, i32
  }
  func.func @transform_1(%arg0: i32) -> (i32, i32) {
    %c0_i32 = arith.constant 0 : i32
    %c0_i32_0 = arith.constant 0 : i32
    %c0_i32_1 = arith.constant 0 : i32
    return %c0_i32, %c0_i32_0 : i32, i32
  }
  func.func @transform_2(%arg0: i32) -> (i32, i32) {
    %c0_i32 = arith.constant 0 : i32
    %c0_i32_0 = arith.constant 0 : i32
    %c0_i32_1 = arith.constant 0 : i32
    return %c0_i32, %c0_i32_0 : i32, i32
  }
  func.func @transform_3(%arg0: i32) -> (i32, i32) {
    %c0_i32 = arith.constant 0 : i32
    %c0_i32_0 = arith.constant 0 : i32
    return %arg0, %c0_i32 : i32, i32
  }
}

</mosaic_0001>

<bundles_post_ra>
// kernel: tpu_custom_call.1
= control target key start
LH: loop header
LB: loop body
LE: loop exit
PB: predicated region body
PF: predicated region fallthrough
CT: control target
= control target key end

     0   :  { %s265_s0 = inlined_call_operand.vmem [shape: bf16[72,32], index: 0, kind: input, shape index: {}]   ;;  %s266_s1 = inlined_call_operand.vmem [shape: bf16[32,128], index: 1, kind: input, shape index: {}]   ;;  %s267_s2 = inlined_call_operand.vmem [shape: f32[1,128], index: 2, kind: input, shape index: {}]   ;;  %s268_s3 = inlined_call_operand.hbm [shape: f32[72,128], index: 3, kind: output, shape index: {}]  }
   0x1   :  { %v178_v0 = vld [vmem:[%s266_s1 + $0x8] sm:$0xff]  ;;  %v24_v1 = vld [vmem:[%s265_s0 + $0x20] sm:$0xf] }
   0x2   :  { %180 = vmatpush.bf16.msra.mxu2 %v178_v0  ;;  %v177_v2 = vld [vmem:[%s266_s1] sm:$0xff]  ;;  %181 = vmatpush.bf16.msra.mxu3 %v178_v0  ;;  %v50_v3 = vunpack.c.l.b16 %v24_v1 }
   0x3   :  { %90 = vmatpush.bf16.msra.mxu0 %v178_v0  ;;  %179 = vmatpush.bf16.msra.mxu1 %v178_v0 }
   0x4   :  { %8 = vsyncpa [#allocation3], 0  ;;  %v175_v4 = vld [vmem:[%s265_s0 + $0x10] sm:$0xff]  ;;  %v55_v5 = vpack.c.b16 %v50_v3, %v50_v3  ;;  %vm68_vm0 = vcmask 261120   ;;  %v173_v6 = vld [vmem:[%s265_s0] sm:$0xff]  ;;  %s132_s29 = sshll.u32 %s268_s3, 4  ;;  %s133_s29 = int_to_ptr.hbm [resolvable:$true] %s132_s29 }
   0x5   :  { %v174_v7 = vld [vmem:[%s265_s0 + $0x8] sm:$0xff]  ;;  %v176_v8 = vld [vmem:[%s265_s0 + $0x18] sm:$0xff]  ;;  %v188_v9 = vld [vmem:[%s267_s2] ss:$0 sm:$0xff]  ;;  %s215_s0 = smov [#allocation2]   ;;  %s216_s30 = smov 128  }
   0x6   :  { %183 = vmatpush.bf16.msra.mxu2 %v177_v2  ;;  %184 = vmatpush.bf16.msra.mxu3 %v177_v2  ;;  %s130_s2 = sshll.u32 %s215_s0, 4  ;;  %s217_s4 = smov 8   ;;  %s131_s2 = int_to_ptr.vmem [resolvable:$true] %s130_s2 }
   0x7   :  { %91 = vmatpush.bf16.msra.mxu0 %v177_v2  ;;  %182 = vmatpush.bf16.msra.mxu1 %v177_v2 }
   0x9   :  { %170 = vmatmul.msk.bf16.vlgmr.msra.gmra.mxu2 %vm68_vm0, %v175_v4  ;;  %172 = vmatmul.msk.bf16.vlgmr.msra.gmra.mxu3 %vm68_vm0, %v55_v5 }
   0xa   :  { %168 = vmatmul.msk.bf16.vlgmr.msra.gmra.mxu0 %vm68_vm0, %v173_v6  ;;  %169 = vmatmul.msk.bf16.vlgmr.msra.gmra.mxu1 %vm68_vm0, %v174_v7 }
  0x19   :  { %171 = vmatmul.msk.bf16.gmra.mxu2 %vm68_vm0, %v176_v8 }
  0x87   :  { %v93_v10 = vpop.f32.mrf.mxu0  ;;  %v98_v11 = vpop.f32.mrf.mxu1 }
  0x88   :  { %v94_v12 = vadd.f32 %v188_v9, %v93_v10  ;;  %v99_v13 = vadd.f32 %v188_v9, %v98_v11 }
  0x8a   :  { %117 = vst [vmem:[#allocation2] sm:$0xff] %v94_v12 }
  0x8b   :  { %119 = vst [vmem:[#allocation2 + $0x10] sm:$0xff] %v99_v13 }
  0x8c   :  { %v103_v14 = vpop.f32.mrf.mxu2  ;;  %v113_v15 = vpop.f32.mrf.mxu3 }
  0x8d   :  { %v104_v16 = vadd.f32 %v188_v9, %v103_v14  ;;  %v114_v17 = vadd.f32 %v188_v9, %v113_v15 }
  0x8f   :  { %121 = vst [vmem:[#allocation2 + $0x20] sm:$0xff] %v104_v16  ;;  %v95_v18 = vpop.f32.mrf.mxu0  ;;  %v100_v19 = vpop.f32.mrf.mxu1 }
  0x90   :  { %125 = vst [vmem:[#allocation2 + $0x40] sm:$0xff] %v114_v17  ;;  %v96_v20 = vadd.f32 %v188_v9, %v95_v18  ;;  %v101_v21 = vadd.f32 %v188_v9, %v100_v19 }
  0x92   :  { %118 = vst [vmem:[#allocation2 + $0x8] sm:$0xff] %v96_v20 }
  0x93   :  { %120 = vst [vmem:[#allocation2 + $0x18] sm:$0xff] %v101_v21 }
  0x94   :  { %v105_v22 = vpop.f32.mrf.mxu2  ;;  %v115_v23 = vpop.f32.mrf.mxu3 }
  0x95   :  { %v106_v24 = vadd.f32 %v188_v9, %v105_v22 }
  0x97   :  { %122 = vst [vmem:[#allocation2 + $0x28] sm:$0xff] %v106_v24 }
  0x9c   :  { %v108_v25 = vpop.f32.mrf.mxu2 }
  0x9d   :  { %v109_v26 = vadd.f32 %v188_v9, %v108_v25 }
  0x9f   :  { %123 = vst [vmem:[#allocation2 + $0x30] sm:$0xff] %v109_v26 }
  0xa4   :  { %v110_v27 = vpop.f32.mrf.mxu2 }
  0xa5   :  { %v111_v28 = vadd.f32 %v188_v9, %v110_v27 }
  0xa7   :  { %124 = vst [vmem:[#allocation2 + $0x38] sm:$0xff] %v111_v28 }
  0xa8   :  { %138 = dma.vmem_to_hbm [thread:$0]  %s131_s2, 1152, %s133_s29, [#allocation3], %s216_s30, %s216_s30, %s217_s4  }
  0xa9   :  { %213 = dma.done.wait [#allocation3], 1152  }
  0xaa   :  { %214 = vsyncadd [#allocation3], 4294966144 }
  0xab   :  { %143 = vsyncpa [#allocation3], 1 }

</bundles_post_ra>
